<compile_context>
chip_gen: v7x
topology: tpu7x:2x2x1
jax: 0.10.0
libtpu: 0.0.40
codegen_flags: <defaults>
</compile_context>

<pallas_src>
import inspect

import jax
import jax.numpy as jnp
from jax.experimental import pallas as pl
from jax.experimental.pallas import tpu as pltpu


def _round_up(x, m):
    return ((x + m - 1) // m) * m


def _pad2(a, rows, cols, dtype):
    a = jnp.asarray(a, dtype).reshape(a.shape if a.ndim == 2 else (1, -1))
    r, c = a.shape
    if r == rows and c == cols:
        return a
    return jnp.pad(a, ((0, rows - r), (0, cols - c)))


def _tpu_info():
    """Best-effort hardware query; conservative fallbacks (64 MiB VMEM, 1 TC).

    This is a pure feature/hardware probe (no kernel compile involved), so a broad
    guard here cannot mask real lowering/VMEM errors.
    """
    vmem_capacity = 64 << 20   # v7x floor; v5e/v6e have 128 MiB
    num_tc = 1                 # v5e/v6e: one TensorCore per chip
    try:
        info = pltpu.get_tpu_info()
        cap = getattr(info, "vmem_capacity_bytes", None)
        if isinstance(cap, int) and cap > 0:
            vmem_capacity = cap
        for attr in ("num_cores", "num_tensorcores", "tensorcores_per_chip", "cores_per_chip"):
            n = getattr(info, attr, None)
            if isinstance(n, int) and n > 0:
                num_tc = n
                break
    except Exception:
        pass
    return vmem_capacity, num_tc


def _single_buffer_mode():
    """Return pl.Buffered(1) if this jax supports single-buffered resident blocks, else None."""
    if not hasattr(pl, "Buffered"):
        return None
    try:
        if "pipeline_mode" not in inspect.signature(pl.BlockSpec).parameters:
            return None
        return pl.Buffered(1)   # constructed here so an unsupported count is caught by the probe
    except Exception:           # feature probe only; no kernel compile involved
        return None


def make_decoder_kernel(H1p, H2p, Op):
    def decoder_kernel(z_ref, w1_ref, w2_ref, w3_ref, b_ref, out_ref):
        # Static lane-aligned slices of the concatenated resident bias block.
        b1 = b_ref[:, :H1p]
        b2 = b_ref[:, H1p:H1p + H2p]
        b3 = b_ref[:, H1p + H2p:H1p + H2p + Op]
        # Layer 1: bf16 MXU matmul with f32 accumulation; bias + ReLU in f32 (VPU).
        h = jnp.dot(z_ref[...], w1_ref[...], preferred_element_type=jnp.float32) + b1
        h = jnp.maximum(h, 0.0)
        # Layer 2
        h = jnp.dot(h.astype(w2_ref.dtype), w2_ref[...], preferred_element_type=jnp.float32) + b2
        h = jnp.maximum(h, 0.0)
        # Layer 3 + sigmoid: exp on the EUP, approx reciprocal also on the EUP
        # (avoids jax.nn.sigmoid's VALU-refined divide).
        h = jnp.dot(h.astype(w3_ref.dtype), w3_ref[...], preferred_element_type=jnp.float32) + b3
        y = pl.reciprocal(1.0 + jnp.exp(-h), approx=True)
        out_ref[...] = y.astype(out_ref.dtype)

    return decoder_kernel


def decoder_forward(z, w1, b1, w2, b2, w3, b3, *, batch_tile=None, lane=128,
                    weight_dtype=jnp.bfloat16, out_dtype=jnp.float32):
    """y = sigmoid(relu(relu(z@w1+b1)@w2+b2)@w3+b3); weights stored as (in, out)."""
    B, latent = z.shape
    h1, h2, out = w1.shape[1], w2.shape[1], w3.shape[1]

    # Lane-align feature dims to 128. Zero padding preserves semantics: padded K
    # rows/cols contribute 0, padded hidden lanes are exactly 0 after ReLU (zero
    # weights + zero bias), padded output lanes are sliced off.
    Lp, H1p, H2p, Op = (_round_up(d, lane) for d in (latent, h1, h2, out))
    Htot = H1p + H2p + Op

    vmem_capacity, num_tc = _tpu_info()

    if batch_tile is None:
        if num_tc >= 2 and B >= 64:
            # Multi-TC part (v7x): split *real* rows across TensorCores.
            batch_tile = min(512, _round_up(pl.cdiv(B, num_tc), 8))
        else:
            # Single TC (v5e/v6e) or tiny batch: one big tile -> grid=(1,) when B fits;
            # larger B uses 512-row tiles to amortize the ~0.35 us/step overhead.
            batch_tile = min(512, _round_up(B, 8))
    batch_tile = max(8, _round_up(batch_tile, 8))
    B_pad = _round_up(B, batch_tile)          # no forced 2*batch_tile garbage rows
    grid = (B_pad // batch_tile,)

    z_p = _pad2(z, B_pad, Lp, weight_dtype)
    w1_p = _pad2(w1, Lp, H1p, weight_dtype)
    w2_p = _pad2(w2, H1p, H2p, weight_dtype)
    w3_p = _pad2(w3, H2p, Op, weight_dtype)
    # All three biases as one resident f32 block (one DMA stream instead of three).
    b_cat = jnp.concatenate(
        [_pad2(b1, 1, H1p, jnp.float32),
         _pad2(b2, 1, H2p, jnp.float32),
         _pad2(b3, 1, Op, jnp.float32)], axis=1)

    buffered_mode = _single_buffer_mode()
    wbytes = jnp.dtype(weight_dtype).itemsize
    obytes = jnp.dtype(out_dtype).itemsize
    buf_factor = 1 if buffered_mode is not None else 2
    weight_bytes = buf_factor * (wbytes * (Lp * H1p + H1p * H2p + H2p * Op) + 4 * Htot)
    act_bytes = batch_tile * (2 * Lp * wbytes + 2 * Op * obytes + Htot * 4)
    # TODO(synk): if resident weight bytes ever approach ~70-80% of vmem_capacity
    # (relevant first on v7x's 64 MiB), add an N/K tile grid axis over the widest layer.
    vmem_limit = int(min(vmem_capacity, max(32 << 20, 2 * (weight_bytes + act_bytes))))

    cost = pl.CostEstimate(
        flops=int(2 * B_pad * (Lp * H1p + H1p * H2p + H2p * Op)),
        transcendentals=int(2 * B_pad * Op),   # exp + approx reciprocal
        bytes_accessed=int(B_pad * Lp * wbytes + weight_bytes + B_pad * Op * obytes),
    )

    kernel = make_decoder_kernel(H1p, H2p, Op)

    def build(use_single_buffer):
        def resident(shape):
            kwargs = {}
            if use_single_buffer:
                # Block index never changes -> double-buffering is pure VMEM waste.
                kwargs["pipeline_mode"] = buffered_mode
            return pl.BlockSpec(shape, lambda i: (0, 0), **kwargs)

        in_specs = [
            pl.BlockSpec((batch_tile, Lp), lambda i: (i, 0)),   # z (batch-tiled)
            resident((Lp, H1p)),                                # W1
            resident((H1p, H2p)),                               # W2
            resident((H2p, Op)),                                # W3
            resident((1, Htot)),                                # [b1 | b2 | b3]
        ]
        out_specs = pl.BlockSpec((batch_tile, Op), lambda i: (i, 0))
        return pl.pallas_call(
            kernel,
            out_shape=jax.ShapeDtypeStruct((B_pad, Op), out_dtype),
            grid_spec=pltpu.PrefetchScalarGridSpec(
                num_scalar_prefetch=0,
                grid=grid,
                in_specs=in_specs,
                out_specs=out_specs,
            ),
            compiler_params=pltpu.CompilerParams(
                dimension_semantics=("parallel",),
                vmem_limit_bytes=vmem_limit,
            ),
            cost_estimate=cost,
        )

    args = (z_p, w1_p, w2_p, w3_p, b_cat)
    if buffered_mode is not None:
        try:
            out_pad = build(True)(*args)
        except (TypeError, pltpu.LoweringException):
            # Narrow fallback: pipeline_mode exists in the API but is rejected by lowering.
            out_pad = build(False)(*args)
    else:
        out_pad = build(False)(*args)

    return out_pad[:B, :out]


def init_linear_params(key, in_features, out_features):
    # Deterministic init mimicking nn.Linear's uniform(-1/sqrt(in), 1/sqrt(in)).
    kw, kb = jax.random.split(key)
    bound = 1.0 / jnp.sqrt(in_features)
    w = jax.random.uniform(kw, (in_features, out_features), jnp.float32, -bound, bound)
    b = jax.random.uniform(kb, (1, out_features), jnp.float32, -bound, bound)
    return w, b


def reference_forward(z, w1, b1, w2, b2, w3, b3):
    h = jnp.maximum(z @ w1 + b1, 0.0)
    h = jnp.maximum(h @ w2 + b2, 0.0)
    return jax.nn.sigmoid(h @ w3 + b3)


if __name__ == "__main__":
    # Decoder(latent_size=32, out_size=128) -> hidden dims 32, 64, 128; batch=8
    latent_size, out_size, batch = 32, 128, 8
    key = jax.random.PRNGKey(0)
    kz, k1, k2, k3 = jax.random.split(key, 4)

    z = jax.random.normal(kz, (batch, latent_size), jnp.float32)
    w1, b1 = init_linear_params(k1, latent_size, out_size // 4)
    w2, b2 = init_linear_params(k2, out_size // 4, out_size // 2)
    w3, b3 = init_linear_params(k3, out_size // 2, out_size)

    out = decoder_forward(z, w1, b1, w2, b2, w3, b3)
    out = jax.block_until_ready(out)

    ref = reference_forward(z, w1, b1, w2, b2, w3, b3)
    assert out.shape == (batch, out_size)
    # bf16 weights/activations with f32 accumulation + approx-EUP sigmoid:
    # loosen tolerance vs. the f32 reference.
    assert jnp.allclose(out, ref, atol=2e-2, rtol=2e-2), "mismatch vs. reference"

    print("KERNEL_OK")
</pallas_src>

<mosaic_0001>
module attributes {stable_mosaic.version = 11 : i64} {
  func.func @decoder_kernel(%arg0: i32, %arg1: memref<8x128xbf16, #tpu.memory_space<vmem>>, %arg2: memref<128x128xbf16, #tpu.memory_space<vmem>>, %arg3: memref<128x128xbf16, #tpu.memory_space<vmem>>, %arg4: memref<128x128xbf16, #tpu.memory_space<vmem>>, %arg5: memref<1x384xf32, #tpu.memory_space<vmem>>, %arg6: memref<8x128xf32, #tpu.memory_space<vmem>>) attributes {dimension_semantics = [#tpu.dimension_semantics<parallel>], iteration_bounds = array<i64: 1>, scalar_prefetch = 0 : i64, scratch_operands = 0 : i64, tpu.core_type = #tpu.core_type<tc>, window_params = [{transform_indices = @transform_0, window_bounds = array<i64: 8, 128>}, {pipeline_mode = #tpu.pipeline_mode<synchronous>, transform_indices = @transform_1, window_bounds = array<i64: 128, 128>}, {pipeline_mode = #tpu.pipeline_mode<synchronous>, transform_indices = @transform_2, window_bounds = array<i64: 128, 128>}, {pipeline_mode = #tpu.pipeline_mode<synchronous>, transform_indices = @transform_3, window_bounds = array<i64: 128, 128>}, {pipeline_mode = #tpu.pipeline_mode<synchronous>, transform_indices = @transform_4, window_bounds = array<i64: 1, 384>}, {transform_indices = @transform_5, window_bounds = array<i64: 8, 128>}]} {
    %c0 = arith.constant 0 : index
    %c0_0 = arith.constant 0 : index
    %0 = vector.load %arg5[%c0, %c0_0] : memref<1x384xf32, #tpu.memory_space<vmem>>, vector<1x128xf32>
    %c0_1 = arith.constant 0 : index
    %c128 = arith.constant 128 : index
    %1 = vector.load %arg5[%c0_1, %c128] : memref<1x384xf32, #tpu.memory_space<vmem>>, vector<1x128xf32>
    %c0_2 = arith.constant 0 : index
    %c256 = arith.constant 256 : index
    %2 = vector.load %arg5[%c0_2, %c256] : memref<1x384xf32, #tpu.memory_space<vmem>>, vector<1x128xf32>
    %c0_3 = arith.constant 0 : index
    %c0_4 = arith.constant 0 : index
    %3 = vector.load %arg1[%c0_3, %c0_4] : memref<8x128xbf16, #tpu.memory_space<vmem>>, vector<8x128xbf16>
    %c0_5 = arith.constant 0 : index
    %c0_6 = arith.constant 0 : index
    %4 = vector.load %arg2[%c0_5, %c0_6] : memref<128x128xbf16, #tpu.memory_space<vmem>>, vector<128x128xbf16>
    %cst = arith.constant dense<0.000000e+00> : vector<8x128xf32>
    %5 = tpu.matmul %3, %4, %cst {dimension_numbers = #tpu.dot_dimension_numbers<[1], [0], [0], [1], [0, 0, 1, 1], [], []>} : vector<8x128xbf16>, vector<128x128xbf16>, vector<8x128xf32> -> vector<8x128xf32>
    %6 = vector.broadcast %0 : vector<1x128xf32> to vector<8x128xf32>
    %7 = arith.addf %5, %6 : vector<8x128xf32>
    %cst_7 = arith.constant 0.000000e+00 : f32
    %8 = vector.broadcast %cst_7 : f32 to vector<8x128xf32>
    %9 = arith.maximumf %7, %8 : vector<8x128xf32>
    %10 = arith.truncf %9 : vector<8x128xf32> to vector<8x128xbf16>
    %c0_8 = arith.constant 0 : index
    %c0_9 = arith.constant 0 : index
    %11 = vector.load %arg3[%c0_8, %c0_9] : memref<128x128xbf16, #tpu.memory_space<vmem>>, vector<128x128xbf16>
    %cst_10 = arith.constant dense<0.000000e+00> : vector<8x128xf32>
    %12 = tpu.matmul %10, %11, %cst_10 {dimension_numbers = #tpu.dot_dimension_numbers<[1], [0], [0], [1], [0, 0, 1, 1], [], []>} : vector<8x128xbf16>, vector<128x128xbf16>, vector<8x128xf32> -> vector<8x128xf32>
    %13 = vector.broadcast %1 : vector<1x128xf32> to vector<8x128xf32>
    %14 = arith.addf %12, %13 : vector<8x128xf32>
    %cst_11 = arith.constant 0.000000e+00 : f32
    %15 = vector.broadcast %cst_11 : f32 to vector<8x128xf32>
    %16 = arith.maximumf %14, %15 : vector<8x128xf32>
    %17 = arith.truncf %16 : vector<8x128xf32> to vector<8x128xbf16>
    %c0_12 = arith.constant 0 : index
    %c0_13 = arith.constant 0 : index
    %18 = vector.load %arg4[%c0_12, %c0_13] : memref<128x128xbf16, #tpu.memory_space<vmem>>, vector<128x128xbf16>
    %cst_14 = arith.constant dense<0.000000e+00> : vector<8x128xf32>
    %19 = tpu.matmul %17, %18, %cst_14 {dimension_numbers = #tpu.dot_dimension_numbers<[1], [0], [0], [1], [0, 0, 1, 1], [], []>} : vector<8x128xbf16>, vector<128x128xbf16>, vector<8x128xf32> -> vector<8x128xf32>
    %20 = vector.broadcast %2 : vector<1x128xf32> to vector<8x128xf32>
    %21 = arith.addf %19, %20 : vector<8x128xf32>
    %cst_15 = arith.constant 0.000000e+00 : f32
    %22 = vector.broadcast %cst_15 : f32 to vector<8x128xf32>
    %23 = arith.subf %22, %21 : vector<8x128xf32>
    %24 = math.exp %23 : vector<8x128xf32>
    %cst_16 = arith.constant 1.000000e+00 : f32
    %25 = vector.broadcast %cst_16 : f32 to vector<8x128xf32>
    %26 = arith.addf %25, %24 : vector<8x128xf32>
    %27 = tpu.reciprocal %26 {approx = true} : vector<8x128xf32> -> vector<8x128xf32>
    %c0_17 = arith.constant 0 : index
    %c0_18 = arith.constant 0 : index
    %28 = vector.load %arg6[%c0_17, %c0_18] : memref<8x128xf32, #tpu.memory_space<vmem>>, vector<8x128xf32>
    tpu.vector_store %arg6[%c0_17, %c0_18], %27 {strides = array<i32>} : memref<8x128xf32, #tpu.memory_space<vmem>>, vector<8x128xf32>,
    return
  }
  func.func @transform_0(%arg0: i32) -> (i32, i32) {
    %c0_i32 = arith.constant 0 : i32
    %c0_i32_0 = arith.constant 0 : i32
    return %arg0, %c0_i32 : i32, i32
  }
  func.func @transform_1(%arg0: i32) -> (i32, i32) {
    %c0_i32 = arith.constant 0 : i32
    %c0_i32_0 = arith.constant 0 : i32
    %c0_i32_1 = arith.constant 0 : i32
    return %c0_i32, %c0_i32_0 : i32, i32
  }
  func.func @transform_2(%arg0: i32) -> (i32, i32) {
    %c0_i32 = arith.constant 0 : i32
    %c0_i32_0 = arith.constant 0 : i32
    %c0_i32_1 = arith.constant 0 : i32
    return %c0_i32, %c0_i32_0 : i32, i32
  }
  func.func @transform_3(%arg0: i32) -> (i32, i32) {
    %c0_i32 = arith.constant 0 : i32
    %c0_i32_0 = arith.constant 0 : i32
    %c0_i32_1 = arith.constant 0 : i32
    return %c0_i32, %c0_i32_0 : i32, i32
  }
  func.func @transform_4(%arg0: i32) -> (i32, i32) {
    %c0_i32 = arith.constant 0 : i32
    %c0_i32_0 = arith.constant 0 : i32
    %c0_i32_1 = arith.constant 0 : i32
    return %c0_i32, %c0_i32_0 : i32, i32
  }
  func.func @transform_5(%arg0: i32) -> (i32, i32) {
    %c0_i32 = arith.constant 0 : i32
    %c0_i32_0 = arith.constant 0 : i32
    return %arg0, %c0_i32 : i32, i32
  }
}

</mosaic_0001>

<bundles_post_ra>
// kernel: tpu_custom_call.1
= control target key start
LH: loop header
LB: loop body
LE: loop exit
PB: predicated region body
PF: predicated region fallthrough
CT: control target
= control target key end

     0   :  { %10 = vsyncpa [#allocation3], 0  ;;  %s852_s0 = inlined_call_operand.hbm [shape: bf16[8,128], index: 0, kind: input, shape index: {}]   ;;  %s853_s1 = inlined_call_operand.hbm [shape: bf16[128,128], index: 1, kind: input, shape index: {}]   ;;  %s854_s2 = inlined_call_operand.hbm [shape: bf16[128,128], index: 2, kind: input, shape index: {}]   ;;  %s855_s3 = inlined_call_operand.hbm [shape: bf16[128,128], index: 3, kind: input, shape index: {}]   ;;  %s856_s4 = inlined_call_operand.vmem [shape: f32[1,384], index: 4, kind: input, shape index: {}]   ;;  %s857_s5 = inlined_call_operand.hbm [shape: f32[8,128], index: 5, kind: output, shape index: {}]  }
   0x1   :  { %11 = vsyncpa [#allocation6], 0 }
   0x2   :  { %12 = vsyncpa [#allocation9], 0 }
   0x3   :  { %13 = vsyncpa [#allocation4], 0  ;;  %s705_s18 = smov [#allocation5]   ;;  %s587_s22 = scalar_lea.hbm %s853_s1, 1024 }
   0x4   :  { %s29_s19 = sshll.u32 %s705_s18, 4  ;;  %p588_p0 = scmp.ne.s32.totalorder %s853_s1, %s587_s22  ;;  %s30_s19 = int_to_ptr.vmem [resolvable:$true] %s29_s19 }
   0x5   :  { %p591_p1 = scmp.lt.u32.totalorder %s587_s22, %s853_s1 }
   0x7   :  { %p593_p2 = pnand %p591_p1, %p588_p0 }
   0x9   :  { %596 = shalt.err (!%p593_p2)
}
   0xa   :  { %s597_s27 = scalar_lea.vmem %s30_s19, 1024  ;;  %p602_p4 = scmp.lt.s32.totalorder %s30_s19, %s30_s19 }
   0xb   :  { %p598_p3 = scmp.ne.s32.totalorder %s30_s19, %s597_s27  ;;  %p603_p5 = scmp.lt.s32.totalorder %s597_s27, %s597_s27 }
   0xd   :  { %p604_p6 = por %p603_p5, %p602_p4 }
   0xf   :  { %p605_p7 = pnand %p604_p6, %p598_p3 }
  0x11   :  { %608 = shalt.err (!%p605_p7)
}
  0x12   :  { %s706_s28 = smov 64   ;;  %s707_s29 = smov 4  }
  0x13   :  { %35 = dma.hbm_to_vmem [thread:$0]  %s853_s1, 1024, %s30_s19, [#allocation6], %s706_s28, %s706_s28, %s707_s29  }
  0x14   :  { %s708_s7 = smov [#allocation2]   ;;  %s709_s9 = smov [#allocation7]  }
  0x15   :  { %s20_s8 = sshll.u32 %s708_s7, 4  ;;  %s41_s10 = sshll.u32 %s709_s9, 4  ;;  %s21_s8 = int_to_ptr.vmem [resolvable:$true] %s20_s8  ;;  %s42_s10 = int_to_ptr.vmem [resolvable:$true] %s41_s10 }
  0x16   :  { %s609_s13 = scalar_lea.hbm %s852_s0, 64 }
  0x17   :  { %p610_p8 = scmp.ne.s32.totalorder %s852_s0, %s609_s13  ;;  %p613_p9 = scmp.lt.u32.totalorder %s609_s13, %s852_s0 }
  0x19   :  { %p615_p10 = pnand %p613_p9, %p610_p8 }
  0x1b   :  { %618 = shalt.err (!%p615_p10)
}
  0x1c   :  { %s619_s1 = scalar_lea.vmem %s21_s8, 64  ;;  %p624_p12 = scmp.lt.s32.totalorder %s21_s8, %s21_s8 }
  0x1d   :  { %p620_p11 = scmp.ne.s32.totalorder %s21_s8, %s619_s1  ;;  %p625_p13 = scmp.lt.s32.totalorder %s619_s1, %s619_s1 }
  0x1f   :  { %p626_p0 = por %p625_p13, %p624_p12 }
  0x21   :  { %p627_p1 = pnand %p626_p0, %p620_p11 }
  0x23   :  { %630 = shalt.err (!%p627_p1)
}
  0x24   :  { %23 = dma.hbm_to_vmem [thread:$0]  %s852_s0, 64, %s21_s8, [#allocation3]  }
  0x25   :  { %s631_s22 = scalar_lea.hbm %s854_s2, 1024 }
  0x26   :  { %p632_p2 = scmp.ne.s32.totalorder %s854_s2, %s631_s22  ;;  %p635_p3 = scmp.lt.u32.totalorder %s631_s22, %s854_s2 }
  0x28   :  { %p637_p4 = pnand %p635_p3, %p632_p2 }
  0x2a   :  { %640 = shalt.err (!%p637_p4)
}
  0x2b   :  { %s641_s27 = scalar_lea.vmem %s42_s10, 1024  ;;  %p646_p6 = scmp.lt.s32.totalorder %s42_s10, %s42_s10 }
  0x2c   :  { %p642_p5 = scmp.ne.s32.totalorder %s42_s10, %s641_s27  ;;  %p647_p7 = scmp.lt.s32.totalorder %s641_s27, %s641_s27 }
  0x2e   :  { %p648_p8 = por %p647_p7, %p646_p6 }
  0x30   :  { %p649_p9 = pnand %p648_p8, %p642_p5 }
  0x32   :  { %652 = shalt.err (!%p649_p9)
}
  0x33   :  { %47 = dma.hbm_to_vmem [thread:$0]  %s854_s2, 1024, %s42_s10, [#allocation6], %s706_s28, %s706_s28, %s707_s29  }
  0x34   :  { %s710_s6 = smov [#allocation8]   ;;  %s653_s11 = scalar_lea.hbm %s855_s3, 1024 }
  0x35   :  { %s53_s7 = sshll.u32 %s710_s6, 4  ;;  %p654_p10 = scmp.ne.s32.totalorder %s855_s3, %s653_s11  ;;  %s54_s7 = int_to_ptr.vmem [resolvable:$true] %s53_s7 }
  0x36   :  { %p657_p11 = scmp.lt.u32.totalorder %s653_s11, %s855_s3 }
  0x38   :  { %p659_p12 = pnand %p657_p11, %p654_p10 }
  0x3a   :  { %662 = shalt.err (!%p659_p12)
}
  0x3b   :  { %s663_s16 = scalar_lea.vmem %s54_s7, 1024  ;;  %p668_p0 = scmp.lt.s32.totalorder %s54_s7, %s54_s7 }
  0x3c   :  { %p664_p13 = scmp.ne.s32.totalorder %s54_s7, %s663_s16  ;;  %p669_p1 = scmp.lt.s32.totalorder %s663_s16, %s663_s16 }
  0x3e   :  { %p670_p2 = por %p669_p1, %p668_p0 }
  0x40   :  { %p671_p3 = pnand %p670_p2, %p664_p13 }
  0x42   :  { %674 = shalt.err (!%p671_p3)
}
  0x43   :  { %59 = dma.hbm_to_vmem [thread:$0]  %s855_s3, 1024, %s54_s7, [#allocation9], %s706_s28, %s706_s28, %s707_s29  }
  0x44   :  { %697 = dma.done.wait [#allocation3], 64  }
  0x45   :  { %698 = vsyncadd [#allocation3], 4294967232 }
  0x46   :  { %699 = dma.done.wait [#allocation6], 2048  }
  0x47   :  { %700 = vsyncadd [#allocation6], 4294965248 }
  0x48   :  { %701 = dma.done.wait [#allocation9], 1024  }
  0x49   :  { %702 = vsyncadd [#allocation9], 4294966272  ;;  %v711_v0 = vmov 0.0   ;;  %vm712_vm0 = vmmov 0   ;;  %v559_v1 = vld [vmem:[#allocation5] sm:$0xff]   ;;  %v560_v2 = vld [vmem:[#allocation5 + $0x8] sm:$0xff]  }
  0x4a   :  { %490 = vmatprep.subr.bf16.mxu0 %v711_v0  ;;  %506 = vmatprep.mubr.msk.bf16.mxu0 %vm712_vm0, %v711_v0  ;;  %v561_v3 = vld [vmem:[#allocation5 + $0x10] sm:$0xff]   ;;  %v567_v4 = vld [vmem:[#allocation7] sm:$0xff]   ;;  %v562_v5 = vld [vmem:[#allocation5 + $0x18] sm:$0xff]   ;;  %s713_s19 = smov [#allocation10]  }
  0x4b   :  { %510 = vmatprep.subr.bf16.mxu1 %v711_v0  ;;  %526 = vmatprep.mubr.msk.bf16.mxu1 %vm712_vm0, %v711_v0  ;;  %v568_v6 = vld [vmem:[#allocation7 + $0x8] sm:$0xff]   ;;  %v563_v7 = vld [vmem:[#allocation5 + $0x20] sm:$0xff]   ;;  %v569_v8 = vld [vmem:[#allocation7 + $0x10] sm:$0xff]   ;;  %s425_s20 = sshll.u32 %s713_s19, 4  ;;  %s426_s20 = int_to_ptr.vmem [resolvable:$true] %s425_s20 }
  0x4c   :  { %491 = vmatpush3.bf16.msra.mxu0 %v559_v1  ;;  %511 = vmatpush3.bf16.msra.mxu1 %v567_v4  ;;  %v564_v9 = vld [vmem:[#allocation5 + $0x28] sm:$0xff]   ;;  %v570_v10 = vld [vmem:[#allocation7 + $0x18] sm:$0xff]   ;;  %v565_v11 = vld [vmem:[#allocation5 + $0x30] sm:$0xff]   ;;  %s675_s21 = scalar_lea.vmem %s426_s20, 128  ;;  %p680_p5 = scmp.lt.s32.totalorder %s426_s20, %s426_s20 }
  0x4d   :  { %492 = vmatprep.subr.bf16.mxu0 %v711_v0  ;;  %512 = vmatprep.subr.bf16.mxu1 %v711_v0  ;;  %v571_v12 = vld [vmem:[#allocation7 + $0x20] sm:$0xff]   ;;  %v566_v13 = vld [vmem:[#allocation5 + $0x38] sm:$0xff]   ;;  %v572_v14 = vld [vmem:[#allocation7 + $0x28] sm:$0xff]   ;;  %p676_p4 = scmp.ne.s32.totalorder %s426_s20, %s675_s21  ;;  %p681_p6 = scmp.lt.s32.totalorder %s675_s21, %s675_s21 }
  0x4e   :  { %v78_v15 = vld [vmem:[#allocation2] sm:$0xf]  ;;  %v573_v16 = vld [vmem:[#allocation7 + $0x30] sm:$0xff]   ;;  %v575_v18 = vld [vmem:[#allocation8] sm:$0xff]  }
  0x4f   :  { %v574_v17 = vld [vmem:[#allocation7 + $0x38] sm:$0xff]   ;;  %v576_v19 = vld [vmem:[#allocation8 + $0x8] sm:$0xff]   ;;  %v577_v20 = vld [vmem:[#allocation8 + $0x10] sm:$0xff]   ;;  %p682_p7 = por %p681_p6, %p680_p5 }
  0x50   :  { %493 = vmatpush3.bf16.msra.mxu0 %v560_v2  ;;  %513 = vmatpush3.bf16.msra.mxu1 %v568_v6  ;;  %v578_v21 = vld [vmem:[#allocation8 + $0x18] sm:$0xff]   ;;  %v579_v22 = vld [vmem:[#allocation8 + $0x20] sm:$0xff]   ;;  %v580_v23 = vld [vmem:[#allocation8 + $0x28] sm:$0xff]  }
  0x51   :  { %494 = vmatprep.subr.bf16.mxu0 %v711_v0  ;;  %514 = vmatprep.subr.bf16.mxu1 %v711_v0  ;;  %v436_v24 = vld [vmem:[%s856_s4] ss:$0 sm:$0xff]  ;;  %v581_v32 = vld [vmem:[#allocation8 + $0x30] sm:$0xff]   ;;  %v445_v34 = vld [vmem:[%s856_s4 + $0x1] ss:$0 sm:$0xff]  ;;  %p683_p8 = pnand %p682_p7, %p676_p4 }
  0x52   :  { %v582_v33 = vld [vmem:[#allocation8 + $0x38] sm:$0xff]  }
  0x53   :  { %v454_v42 = vld [vmem:[%s856_s4 + $0x2] ss:$0 sm:$0xff] }
  0x54   :  { %495 = vmatpush3.bf16.msra.mxu0 %v561_v3  ;;  %515 = vmatpush3.bf16.msra.mxu1 %v569_v8 }
  0x55   :  { %496 = vmatprep.subr.bf16.mxu0 %v711_v0  ;;  %516 = vmatprep.subr.bf16.mxu1 %v711_v0 }
  0x58   :  { %497 = vmatpush3.bf16.msra.mxu0 %v562_v5  ;;  %517 = vmatpush3.bf16.msra.mxu1 %v570_v10 }
  0x59   :  { %498 = vmatprep.subr.bf16.mxu0 %v711_v0  ;;  %518 = vmatprep.subr.bf16.mxu1 %v711_v0 }
  0x5c   :  { %499 = vmatpush3.bf16.msra.mxu0 %v563_v7  ;;  %519 = vmatpush3.bf16.msra.mxu1 %v571_v12 }
  0x5d   :  { %500 = vmatprep.subr.bf16.mxu0 %v711_v0  ;;  %520 = vmatprep.subr.bf16.mxu1 %v711_v0 }
  0x60   :  { %501 = vmatpush3.bf16.msra.mxu0 %v564_v9  ;;  %521 = vmatpush3.bf16.msra.mxu1 %v572_v14 }
  0x61   :  { %502 = vmatprep.subr.bf16.mxu0 %v711_v0  ;;  %522 = vmatprep.subr.bf16.mxu1 %v711_v0 }
  0x64   :  { %503 = vmatpush3.bf16.msra.mxu0 %v565_v11  ;;  %523 = vmatpush3.bf16.msra.mxu1 %v573_v16 }
  0x65   :  { %504 = vmatprep.subr.bf16.mxu0 %v711_v0  ;;  %524 = vmatprep.subr.bf16.mxu1 %v711_v0 }
  0x68   :  { %505 = vmatpush3.bf16.msra.mxu0 %v566_v13  ;;  %525 = vmatpush3.bf16.msra.mxu1 %v574_v17 }
  0x69   :  { %530 = vmatprep.subr.bf16.mxu0 %v711_v0 }
  0x6b   :  { %507 = vmatmul.mubr.bf16.vlgmr.msra.gmra.mrb[0].mxu0 %v78_v15 }
  0x6c   :  { %546 = vmatprep.mubr.msk.bf16.mxu0 %vm712_vm0, %v711_v0  ;;  %531 = vmatpush3.bf16.msra.mxu0 %v575_v18 }
  0x6d   :  { %532 = vmatprep.subr.bf16.mxu0 %v711_v0 }
  0x70   :  { %533 = vmatpush3.bf16.msra.mxu0 %v576_v19 }
  0x71   :  { %534 = vmatprep.subr.bf16.mxu0 %v711_v0 }
  0x74   :  { %535 = vmatpush3.bf16.msra.mxu0 %v577_v20 }
  0x75   :  { %536 = vmatprep.subr.bf16.mxu0 %v711_v0 }
  0x78   :  { %537 = vmatpush3.bf16.msra.mxu0 %v578_v21 }
  0x79   :  { %538 = vmatprep.subr.bf16.mxu0 %v711_v0 }
  0x7c   :  { %539 = vmatpush3.bf16.msra.mxu0 %v579_v22 }
  0x7d   :  { %540 = vmatprep.subr.bf16.mxu0 %v711_v0 }
  0x80   :  { %541 = vmatpush3.bf16.msra.mxu0 %v580_v23 }
  0x81   :  { %542 = vmatprep.subr.bf16.mxu0 %v711_v0 }
  0x84   :  { %543 = vmatpush3.bf16.msra.mxu0 %v581_v32 }
  0x85   :  { %544 = vmatprep.subr.bf16.mxu0 %v711_v0 }
  0x88   :  { %545 = vmatpush3.bf16.msra.mxu0 %v582_v33 }
 0x13e   :  { %v183_v25 = vpop.f32.mrb[0].mxu0 }
 0x13f   :  { %v184_v26 = vadd.f32 %v436_v24, %v183_v25  ;;  %v508_v27 = vpop.f32.mrb[1].mxu0 }
 0x140   :  { %v186_v28 = vpop.f32.mrb[2].mxu0 }
 0x141   :  { %v189_v29 = vmax.f32 %v184_v26, 0.0  ;;  %v509_v30 = vpop.f32.mrb[3].mxu0 }
 0x143   :  { %v190_v31 = vpack.c.bf16 %v189_v29, %v189_v29 }
 0x145   :  { %527 = vmatmul.mubr.bf16.vlgmr.msra.gmra.mrb[0].mxu1 %v190_v31 }
 0x218   :  { %v295_v35 = vpop.f32.mrb[0].mxu1 }
 0x219   :  { %v296_v36 = vadd.f32 %v445_v34, %v295_v35  ;;  %v528_v37 = vpop.f32.mrb[1].mxu1 }
 0x21a   :  { %v298_v38 = vpop.f32.mrb[2].mxu1 }
 0x21b   :  { %v301_v39 = vmax.f32 %v296_v36, 0.0  ;;  %v529_v40 = vpop.f32.mrb[3].mxu1 }
 0x21d   :  { %v302_v41 = vpack.c.bf16 %v301_v39, %v301_v39 }
 0x21f   :  { %547 = vmatmul.mubr.bf16.vlgmr.msra.gmra.mrb[4].mxu0 %v302_v41 }
 0x2f2   :  { %v407_v43 = vpop.f32.mrb[4].mxu0 }
 0x2f3   :  { %v408_v44 = vadd.f32 %v454_v42, %v407_v43  ;;  %v548_v45 = vpop.f32.mrb[5].mxu0 }
 0x2f4   :  { %v410_v46 = vpop.f32.mrb[6].mxu0 }
 0x2f5   :  { %v413_v47 = vsub.f32 0.0, %v408_v44  ;;  %v549_v48 = vpop.f32.mrb[7].mxu0 }
 0x2f7   :  { %v414_v49 = vmul.f32 1.442695, %v413_v47 }
 0x2f9   :  { %583 = vpow2.f32 %v414_v49 }
 0x303   :  { %v584_v50 = vpop.eup %583 }
 0x304   :  { %v416_v51 = vadd.f32 1.0, %v584_v50 }
 0x306   :  { %585 = vrcp.f32 %v416_v51 }
 0x310   :  { %v586_v52 = vpop.eup %585 }
 0x311   :  { %418 = vst [vmem:[#allocation10] sm:$0xff] %v586_v52 }
 0x312   :  { %686 = shalt.err (!%p683_p8)
}
 0x313   :  { %s687_s23 = scalar_lea.hbm %s857_s5, 128 }
 0x314   :  { %p688_p9 = scmp.ne.s32.totalorder %s857_s5, %s687_s23  ;;  %p691_p10 = scmp.lt.u32.totalorder %s687_s23, %s857_s5 }
 0x316   :  { %p693_p11 = pnand %p691_p10, %p688_p9 }
 0x318   :  { %696 = shalt.err (!%p693_p11)
}
 0x319   :  { %428 = dma.vmem_to_hbm [thread:$0]  %s426_s20, 128, %s857_s5, [#allocation4]  }
 0x31a   :  { %703 = dma.done.wait [#allocation4], 128  }
 0x31b   :  { %704 = vsyncadd [#allocation4], 4294967168 }
 0x31c   :  { %432 = vsyncpa [#allocation3], 1 }
 0x31d   :  { %433 = vsyncpa [#allocation6], 1 }
 0x31e   :  { %434 = vsyncpa [#allocation9], 1 }
 0x31f   :  { %435 = vsyncpa [#allocation4], 1 }

</bundles_post_ra>
